<compile_context>
chip_gen: v5e
topology: v5e:2x2
jax: 0.10.0
libtpu: 0.0.40
codegen_flags: <defaults>
</compile_context>

<pallas_src>
import functools

import jax
import jax.numpy as jnp
from jax.experimental import pallas as pl
from jax.experimental.pallas import tpu as pltpu


# ---------------------------------------------------------------------------
# Fused kernel: QKV projection + per-head attention + concat + out-proj + LN
# for one batch element.  grid = (B,).
# ---------------------------------------------------------------------------
def _mha_fused_kernel(x_ref, m_ref, wqkv_ref, bqkv_ref, wo_ref, bo_ref,
                      g_ref, beta_ref, o_ref, *, num_heads, dim_out, seq_len):
    x = x_ref[0]                         # (S, Din) bf16
    mask = m_ref[0] != 0                 # (S, S) bool (True = masked out)
    hd = num_heads * dim_out

    # One wide QKV projection on the MXU: (S, Din) x (Din, 3*H*Dout), f32 acc.
    qkv = jnp.dot(x, wqkv_ref[...],
                  preferred_element_type=jnp.float32) + bqkv_ref[...]

    # torch quirk: scale = query.size(1) ** 0.5 == sqrt(seq_len)
    inv_scale = jnp.float32(1.0 / (float(seq_len) ** 0.5))

    heads = []
    for h in range(num_heads):           # unrolled at trace time
        lo = h * dim_out
        qh = (qkv[:, lo:lo + dim_out] * inv_scale).astype(jnp.bfloat16)
        kh = qkv[:, hd + lo:hd + lo + dim_out].astype(jnp.bfloat16)
        vh = qkv[:, 2 * hd + lo:2 * hd + lo + dim_out].astype(jnp.bfloat16)

        scores = jnp.dot(qh, kh.T, preferred_element_type=jnp.float32)  # (S,S)
        scores = jnp.where(mask, jnp.float32(-1e9), scores)

        # numerically-stable softmax in f32
        scores = scores - jnp.max(scores, axis=-1, keepdims=True)
        e = jnp.exp(scores)
        attn = e * pl.reciprocal(jnp.sum(e, axis=-1, keepdims=True),
                                 approx=True)

        heads.append(jnp.dot(attn.astype(jnp.bfloat16), vh,
                             preferred_element_type=jnp.float32))

    # torch.cat([head_0, ..., head_{H-1}], dim=-1) -> (S, H*Dout), stays in VMEM
    ctx = jnp.concatenate(heads, axis=-1).astype(jnp.bfloat16)

    # Output projection + LayerNorm epilogue (f32 statistics).
    y = jnp.dot(ctx, wo_ref[...],
                preferred_element_type=jnp.float32) + bo_ref[...]
    mean = jnp.mean(y, axis=-1, keepdims=True)
    var = jnp.mean((y - mean) ** 2, axis=-1, keepdims=True)
    yn = (y - mean) * jax.lax.rsqrt(var + jnp.float32(1e-5))
    o_ref[0] = yn * g_ref[...] + beta_ref[...]


# ---------------------------------------------------------------------------
# Wrapper
# ---------------------------------------------------------------------------
def multi_head_attention(x, attention_mask, params):
    B, S, Din = x.shape
    H, _, Dout = params["wq"].shape
    HD = H * Dout

    # Pack QKV weights head-major: columns [Q_h0..Q_h{H-1} | K_... | V_...].
    def pack_w(w):                       # (H, Din, Dout) -> (Din, H*Dout)
        return jnp.transpose(w, (1, 0, 2)).reshape(Din, HD)

    wqkv = jnp.concatenate(
        [pack_w(params["wq"]), pack_w(params["wk"]), pack_w(params["wv"])],
        axis=1).astype(jnp.bfloat16)                         # (Din, 3*H*Dout)
    bqkv = jnp.concatenate(
        [params["bq"].reshape(HD), params["bk"].reshape(HD),
         params["bv"].reshape(HD)]).reshape(1, 3 * HD).astype(jnp.float32)

    wo = params["wo"].astype(jnp.bfloat16)                   # (H*Dout, Din)
    bo = params["bo"].reshape(1, Din).astype(jnp.float32)
    gamma = params["gamma"].reshape(1, Din).astype(jnp.float32)
    beta = params["beta"].reshape(1, Din).astype(jnp.float32)

    x_bf16 = x.astype(jnp.bfloat16)
    mask_i8 = attention_mask.astype(jnp.int8)

    kernel = functools.partial(_mha_fused_kernel,
                               num_heads=H, dim_out=Dout, seq_len=S)

    flops = (2 * B * S * Din * 3 * HD          # QKV projection
             + 4 * B * H * S * S * Dout        # QK^T + attn@V
             + 2 * B * S * HD * Din)           # output projection
    bytes_accessed = (x_bf16.size * 2 + mask_i8.size
                      + wqkv.size * 2 + wo.size * 2
                      + (bqkv.size + bo.size + gamma.size + beta.size) * 4
                      + B * S * Din * 4)

    out = pl.pallas_call(
        kernel,
        out_shape=jax.ShapeDtypeStruct((B, S, Din), jnp.float32),
        grid_spec=pltpu.PrefetchScalarGridSpec(
            num_scalar_prefetch=0,
            grid=(B,),
            in_specs=[
                pl.BlockSpec((1, S, Din), lambda b: (b, 0, 0)),     # x (bf16)
                pl.BlockSpec((1, S, S), lambda b: (b, 0, 0)),       # mask (i8)
                pl.BlockSpec((Din, 3 * HD), lambda b: (0, 0)),      # Wqkv
                pl.BlockSpec((1, 3 * HD), lambda b: (0, 0)),        # bqkv
                pl.BlockSpec((HD, Din), lambda b: (0, 0)),          # W_out
                pl.BlockSpec((1, Din), lambda b: (0, 0)),           # b_out
                pl.BlockSpec((1, Din), lambda b: (0, 0)),           # gamma
                pl.BlockSpec((1, Din), lambda b: (0, 0)),           # beta
            ],
            out_specs=pl.BlockSpec((1, S, Din), lambda b: (b, 0, 0)),
        ),
        compiler_params=pltpu.CompilerParams(
            dimension_semantics=("parallel",)),
        cost_estimate=pl.CostEstimate(
            flops=flops,
            transcendentals=B * H * S * S,
            bytes_accessed=bytes_accessed),
    )(x_bf16, mask_i8, wqkv, bqkv, wo, bo, gamma, beta)

    return out


# ---------------------------------------------------------------------------
# Pure-JAX f32 reference (mirrors the PyTorch forward exactly) for validation.
# ---------------------------------------------------------------------------
def multi_head_attention_ref(x, attention_mask, params):
    B, S, Din = x.shape
    H, _, Dout = params["wq"].shape
    heads = []
    for h in range(H):
        q = x @ params["wq"][h] + params["bq"][h]
        k = x @ params["wk"][h] + params["bk"][h]
        v = x @ params["wv"][h] + params["bv"][h]
        scale = float(S) ** 0.5
        scores = jnp.einsum("bsd,btd->bst", q, k) / scale
        scores = jnp.where(attention_mask, -1e9, scores)
        attn = jax.nn.softmax(scores, axis=-1)
        heads.append(jnp.einsum("bst,btd->bsd", attn, v))
    cat = jnp.concatenate(heads, axis=-1)
    y = cat @ params["wo"] + params["bo"]
    mean = jnp.mean(y, axis=-1, keepdims=True)
    var = jnp.mean((y - mean) ** 2, axis=-1, keepdims=True)
    yn = (y - mean) / jnp.sqrt(var + 1e-5)
    return yn * params["gamma"] + params["beta"]


if __name__ == "__main__":
    B, S, Din, Dout, H = 2, 8, 32, 16, 4

    key = jax.random.PRNGKey(0)
    ks = jax.random.split(key, 12)
    params = {
        "wq": 0.1 * jax.random.normal(ks[0], (H, Din, Dout), jnp.float32),
        "bq": 0.1 * jax.random.normal(ks[1], (H, Dout), jnp.float32),
        "wk": 0.1 * jax.random.normal(ks[2], (H, Din, Dout), jnp.float32),
        "bk": 0.1 * jax.random.normal(ks[3], (H, Dout), jnp.float32),
        "wv": 0.1 * jax.random.normal(ks[4], (H, Din, Dout), jnp.float32),
        "bv": 0.1 * jax.random.normal(ks[5], (H, Dout), jnp.float32),
        "wo": 0.1 * jax.random.normal(ks[6], (H * Dout, Din), jnp.float32),
        "bo": 0.1 * jax.random.normal(ks[7], (Din,), jnp.float32),
        "gamma": jnp.ones((Din,), jnp.float32),
        "beta": jnp.zeros((Din,), jnp.float32),
    }

    x = jax.random.normal(ks[8], (B, S, Din), jnp.float32)
    # Mask out the last two key positions of every sequence (True = masked).
    attention_mask = jnp.zeros((B, S, S), dtype=bool).at[:, :, S - 2:].set(True)

    out = jax.block_until_ready(multi_head_attention(x, attention_mask, params))
    ref = multi_head_attention_ref(x, attention_mask, params)

    assert out.shape == (B, S, Din), out.shape
    # Matmul operands run in bfloat16 (f32 accumulation / softmax / LayerNorm),
    # so allow a bf16-level tolerance against the pure-f32 reference.
    assert jnp.allclose(out, ref, atol=2e-2, rtol=2e-2), \
        float(jnp.max(jnp.abs(out - ref)))
    print("KERNEL_OK")
</pallas_src>

<mosaic_0001>
module attributes {stable_mosaic.version = 11 : i64} {
  func.func @_mha_fused_kernel(%arg0: i32, %arg1: memref<1x8x32xbf16, #tpu.memory_space<vmem>>, %arg2: memref<1x8x8xi8, #tpu.memory_space<vmem>>, %arg3: memref<32x192xbf16, #tpu.memory_space<vmem>>, %arg4: memref<1x192xf32, #tpu.memory_space<vmem>>, %arg5: memref<64x32xbf16, #tpu.memory_space<vmem>>, %arg6: memref<1x32xf32, #tpu.memory_space<vmem>>, %arg7: memref<1x32xf32, #tpu.memory_space<vmem>>, %arg8: memref<1x32xf32, #tpu.memory_space<vmem>>, %arg9: memref<1x8x32xf32, #tpu.memory_space<vmem>>) attributes {dimension_semantics = [#tpu.dimension_semantics<parallel>], iteration_bounds = array<i64: 2>, scalar_prefetch = 0 : i64, scratch_operands = 0 : i64, tpu.core_type = #tpu.core_type<tc>, window_params = [{transform_indices = @transform_0, window_bounds = array<i64: 1, 8, 32>}, {transform_indices = @transform_1, window_bounds = array<i64: 1, 8, 8>}, {pipeline_mode = #tpu.pipeline_mode<synchronous>, transform_indices = @transform_2, window_bounds = array<i64: 32, 192>}, {pipeline_mode = #tpu.pipeline_mode<synchronous>, transform_indices = @transform_3, window_bounds = array<i64: 1, 192>}, {pipeline_mode = #tpu.pipeline_mode<synchronous>, transform_indices = @transform_4, window_bounds = array<i64: 64, 32>}, {pipeline_mode = #tpu.pipeline_mode<synchronous>, transform_indices = @transform_5, window_bounds = array<i64: 1, 32>}, {pipeline_mode = #tpu.pipeline_mode<synchronous>, transform_indices = @transform_6, window_bounds = array<i64: 1, 32>}, {pipeline_mode = #tpu.pipeline_mode<synchronous>, transform_indices = @transform_7, window_bounds = array<i64: 1, 32>}, {transform_indices = @transform_8, window_bounds = array<i64: 1, 8, 32>}]} {
    %c0 = arith.constant 0 : index
    %c0_0 = arith.constant 0 : index
    %c0_1 = arith.constant 0 : index
    %0 = vector.load %arg1[%c0, %c0_0, %c0_1] : memref<1x8x32xbf16, #tpu.memory_space<vmem>>, vector<1x8x32xbf16>
    %1 = vector.shape_cast %0 : vector<1x8x32xbf16> to vector<8x32xbf16>
    %c0_2 = arith.constant 0 : index
    %c0_3 = arith.constant 0 : index
    %c0_4 = arith.constant 0 : index
    %2 = vector.load %arg2[%c0_2, %c0_3, %c0_4] : memref<1x8x8xi8, #tpu.memory_space<vmem>>, vector<1x8x8xi8>
    %3 = vector.shape_cast %2 : vector<1x8x8xi8> to vector<8x8xi8>
    %c0_i8 = arith.constant 0 : i8
    %4 = vector.broadcast %c0_i8 : i8 to vector<8x8xi8>
    %5 = arith.cmpi ne, %3, %4 : vector<8x8xi8>
    %c0_5 = arith.constant 0 : index
    %c0_6 = arith.constant 0 : index
    %6 = vector.load %arg3[%c0_5, %c0_6] : memref<32x192xbf16, #tpu.memory_space<vmem>>, vector<32x192xbf16>
    %cst = arith.constant dense<0.000000e+00> : vector<8x192xf32>
    %7 = tpu.matmul %1, %6, %cst {dimension_numbers = #tpu.dot_dimension_numbers<[1], [0], [0], [1], [0, 0, 1, 1], [], []>} : vector<8x32xbf16>, vector<32x192xbf16>, vector<8x192xf32> -> vector<8x192xf32>
    %c0_7 = arith.constant 0 : index
    %c0_8 = arith.constant 0 : index
    %8 = vector.load %arg4[%c0_7, %c0_8] : memref<1x192xf32, #tpu.memory_space<vmem>>, vector<1x192xf32>
    %9 = vector.broadcast %8 : vector<1x192xf32> to vector<8x192xf32>
    %10 = arith.addf %7, %9 : vector<8x192xf32>
    %11 = vector.extract_strided_slice %10 {offsets = [0, 0], sizes = [8, 16], strides = [1, 1]} : vector<8x192xf32> to vector<8x16xf32>
    %cst_9 = arith.constant 0.353553385 : f32
    %12 = vector.broadcast %cst_9 : f32 to vector<8x16xf32>
    %13 = arith.mulf %11, %12 : vector<8x16xf32>
    %14 = arith.truncf %13 : vector<8x16xf32> to vector<8x16xbf16>
    %15 = vector.extract_strided_slice %10 {offsets = [0, 64], sizes = [8, 16], strides = [1, 1]} : vector<8x192xf32> to vector<8x16xf32>
    %16 = arith.truncf %15 : vector<8x16xf32> to vector<8x16xbf16>
    %17 = vector.extract_strided_slice %10 {offsets = [0, 128], sizes = [8, 16], strides = [1, 1]} : vector<8x192xf32> to vector<8x16xf32>
    %18 = arith.truncf %17 : vector<8x16xf32> to vector<8x16xbf16>
    %19 = tpu.transpose %16, [1, 0] : vector<8x16xbf16> -> vector<16x8xbf16>
    %cst_10 = arith.constant dense<0.000000e+00> : vector<8x8xf32>
    %20 = tpu.matmul %14, %19, %cst_10 {dimension_numbers = #tpu.dot_dimension_numbers<[1], [0], [0], [1], [0, 0, 1, 1], [], []>} : vector<8x16xbf16>, vector<16x8xbf16>, vector<8x8xf32> -> vector<8x8xf32>
    %cst_11 = arith.constant -1.000000e+09 : f32
    %21 = vector.broadcast %cst_11 : f32 to vector<8x8xf32>
    %22 = arith.select %5, %21, %20 : vector<8x8xi1>, vector<8x8xf32>
    %cst_12 = arith.constant dense<0xFF800000> : vector<8xf32>
    %23 = vector.multi_reduction <maximumf>, %22, %cst_12 [1] : vector<8x8xf32> to vector<8xf32>
    %24 = vector.shape_cast %23 : vector<8xf32> to vector<8x1xf32>
    %25 = vector.broadcast %24 : vector<8x1xf32> to vector<8x8xf32>
    %26 = arith.subf %22, %25 : vector<8x8xf32>
    %27 = math.exp %26 : vector<8x8xf32>
    %cst_13 = arith.constant dense<0.000000e+00> : vector<8xf32>
    %28 = vector.multi_reduction <add>, %27, %cst_13 [1] : vector<8x8xf32> to vector<8xf32>
    %29 = vector.shape_cast %28 : vector<8xf32> to vector<8x1xf32>
    %30 = tpu.reciprocal %29 {approx = true} : vector<8x1xf32> -> vector<8x1xf32>
    %31 = vector.broadcast %30 : vector<8x1xf32> to vector<8x8xf32>
    %32 = arith.mulf %27, %31 : vector<8x8xf32>
    %33 = arith.truncf %32 : vector<8x8xf32> to vector<8x8xbf16>
    %cst_14 = arith.constant dense<0.000000e+00> : vector<8x16xf32>
    %34 = tpu.matmul %33, %18, %cst_14 {dimension_numbers = #tpu.dot_dimension_numbers<[1], [0], [0], [1], [0, 0, 1, 1], [], []>} : vector<8x8xbf16>, vector<8x16xbf16>, vector<8x16xf32> -> vector<8x16xf32>
    %35 = vector.extract_strided_slice %10 {offsets = [0, 16], sizes = [8, 16], strides = [1, 1]} : vector<8x192xf32> to vector<8x16xf32>
    %cst_15 = arith.constant 0.353553385 : f32
    %36 = vector.broadcast %cst_15 : f32 to vector<8x16xf32>
    %37 = arith.mulf %35, %36 : vector<8x16xf32>
    %38 = arith.truncf %37 : vector<8x16xf32> to vector<8x16xbf16>
    %39 = vector.extract_strided_slice %10 {offsets = [0, 80], sizes = [8, 16], strides = [1, 1]} : vector<8x192xf32> to vector<8x16xf32>
    %40 = arith.truncf %39 : vector<8x16xf32> to vector<8x16xbf16>
    %41 = vector.extract_strided_slice %10 {offsets = [0, 144], sizes = [8, 16], strides = [1, 1]} : vector<8x192xf32> to vector<8x16xf32>
    %42 = arith.truncf %41 : vector<8x16xf32> to vector<8x16xbf16>
    %43 = tpu.transpose %40, [1, 0] : vector<8x16xbf16> -> vector<16x8xbf16>
    %cst_16 = arith.constant dense<0.000000e+00> : vector<8x8xf32>
    %44 = tpu.matmul %38, %43, %cst_16 {dimension_numbers = #tpu.dot_dimension_numbers<[1], [0], [0], [1], [0, 0, 1, 1], [], []>} : vector<8x16xbf16>, vector<16x8xbf16>, vector<8x8xf32> -> vector<8x8xf32>
    %cst_17 = arith.constant -1.000000e+09 : f32
    %45 = vector.broadcast %cst_17 : f32 to vector<8x8xf32>
    %46 = arith.select %5, %45, %44 : vector<8x8xi1>, vector<8x8xf32>
    %cst_18 = arith.constant dense<0xFF800000> : vector<8xf32>
    %47 = vector.multi_reduction <maximumf>, %46, %cst_18 [1] : vector<8x8xf32> to vector<8xf32>
    %48 = vector.shape_cast %47 : vector<8xf32> to vector<8x1xf32>
    %49 = vector.broadcast %48 : vector<8x1xf32> to vector<8x8xf32>
    %50 = arith.subf %46, %49 : vector<8x8xf32>
    %51 = math.exp %50 : vector<8x8xf32>
    %cst_19 = arith.constant dense<0.000000e+00> : vector<8xf32>
    %52 = vector.multi_reduction <add>, %51, %cst_19 [1] : vector<8x8xf32> to vector<8xf32>
    %53 = vector.shape_cast %52 : vector<8xf32> to vector<8x1xf32>
    %54 = tpu.reciprocal %53 {approx = true} : vector<8x1xf32> -> vector<8x1xf32>
    %55 = vector.broadcast %54 : vector<8x1xf32> to vector<8x8xf32>
    %56 = arith.mulf %51, %55 : vector<8x8xf32>
    %57 = arith.truncf %56 : vector<8x8xf32> to vector<8x8xbf16>
    %cst_20 = arith.constant dense<0.000000e+00> : vector<8x16xf32>
    %58 = tpu.matmul %57, %42, %cst_20 {dimension_numbers = #tpu.dot_dimension_numbers<[1], [0], [0], [1], [0, 0, 1, 1], [], []>} : vector<8x8xbf16>, vector<8x16xbf16>, vector<8x16xf32> -> vector<8x16xf32>
    %59 = vector.extract_strided_slice %10 {offsets = [0, 32], sizes = [8, 16], strides = [1, 1]} : vector<8x192xf32> to vector<8x16xf32>
    %cst_21 = arith.constant 0.353553385 : f32
    %60 = vector.broadcast %cst_21 : f32 to vector<8x16xf32>
    %61 = arith.mulf %59, %60 : vector<8x16xf32>
    %62 = arith.truncf %61 : vector<8x16xf32> to vector<8x16xbf16>
    %63 = vector.extract_strided_slice %10 {offsets = [0, 96], sizes = [8, 16], strides = [1, 1]} : vector<8x192xf32> to vector<8x16xf32>
    %64 = arith.truncf %63 : vector<8x16xf32> to vector<8x16xbf16>
    %65 = vector.extract_strided_slice %10 {offsets = [0, 160], sizes = [8, 16], strides = [1, 1]} : vector<8x192xf32> to vector<8x16xf32>
    %66 = arith.truncf %65 : vector<8x16xf32> to vector<8x16xbf16>
    %67 = tpu.transpose %64, [1, 0] : vector<8x16xbf16> -> vector<16x8xbf16>
    %cst_22 = arith.constant dense<0.000000e+00> : vector<8x8xf32>
    %68 = tpu.matmul %62, %67, %cst_22 {dimension_numbers = #tpu.dot_dimension_numbers<[1], [0], [0], [1], [0, 0, 1, 1], [], []>} : vector<8x16xbf16>, vector<16x8xbf16>, vector<8x8xf32> -> vector<8x8xf32>
    %cst_23 = arith.constant -1.000000e+09 : f32
    %69 = vector.broadcast %cst_23 : f32 to vector<8x8xf32>
    %70 = arith.select %5, %69, %68 : vector<8x8xi1>, vector<8x8xf32>
    %cst_24 = arith.constant dense<0xFF800000> : vector<8xf32>
    %71 = vector.multi_reduction <maximumf>, %70, %cst_24 [1] : vector<8x8xf32> to vector<8xf32>
    %72 = vector.shape_cast %71 : vector<8xf32> to vector<8x1xf32>
    %73 = vector.broadcast %72 : vector<8x1xf32> to vector<8x8xf32>
    %74 = arith.subf %70, %73 : vector<8x8xf32>
    %75 = math.exp %74 : vector<8x8xf32>
    %cst_25 = arith.constant dense<0.000000e+00> : vector<8xf32>
    %76 = vector.multi_reduction <add>, %75, %cst_25 [1] : vector<8x8xf32> to vector<8xf32>
    %77 = vector.shape_cast %76 : vector<8xf32> to vector<8x1xf32>
    %78 = tpu.reciprocal %77 {approx = true} : vector<8x1xf32> -> vector<8x1xf32>
    %79 = vector.broadcast %78 : vector<8x1xf32> to vector<8x8xf32>
    %80 = arith.mulf %75, %79 : vector<8x8xf32>
    %81 = arith.truncf %80 : vector<8x8xf32> to vector<8x8xbf16>
    %cst_26 = arith.constant dense<0.000000e+00> : vector<8x16xf32>
    %82 = tpu.matmul %81, %66, %cst_26 {dimension_numbers = #tpu.dot_dimension_numbers<[1], [0], [0], [1], [0, 0, 1, 1], [], []>} : vector<8x8xbf16>, vector<8x16xbf16>, vector<8x16xf32> -> vector<8x16xf32>
    %83 = vector.extract_strided_slice %10 {offsets = [0, 48], sizes = [8, 16], strides = [1, 1]} : vector<8x192xf32> to vector<8x16xf32>
    %cst_27 = arith.constant 0.353553385 : f32
    %84 = vector.broadcast %cst_27 : f32 to vector<8x16xf32>
    %85 = arith.mulf %83, %84 : vector<8x16xf32>
    %86 = arith.truncf %85 : vector<8x16xf32> to vector<8x16xbf16>
    %87 = vector.extract_strided_slice %10 {offsets = [0, 112], sizes = [8, 16], strides = [1, 1]} : vector<8x192xf32> to vector<8x16xf32>
    %88 = arith.truncf %87 : vector<8x16xf32> to vector<8x16xbf16>
    %89 = vector.extract_strided_slice %10 {offsets = [0, 176], sizes = [8, 16], strides = [1, 1]} : vector<8x192xf32> to vector<8x16xf32>
    %90 = arith.truncf %89 : vector<8x16xf32> to vector<8x16xbf16>
    %91 = tpu.transpose %88, [1, 0] : vector<8x16xbf16> -> vector<16x8xbf16>
    %cst_28 = arith.constant dense<0.000000e+00> : vector<8x8xf32>
    %92 = tpu.matmul %86, %91, %cst_28 {dimension_numbers = #tpu.dot_dimension_numbers<[1], [0], [0], [1], [0, 0, 1, 1], [], []>} : vector<8x16xbf16>, vector<16x8xbf16>, vector<8x8xf32> -> vector<8x8xf32>
    %cst_29 = arith.constant -1.000000e+09 : f32
    %93 = vector.broadcast %cst_29 : f32 to vector<8x8xf32>
    %94 = arith.select %5, %93, %92 : vector<8x8xi1>, vector<8x8xf32>
    %cst_30 = arith.constant dense<0xFF800000> : vector<8xf32>
    %95 = vector.multi_reduction <maximumf>, %94, %cst_30 [1] : vector<8x8xf32> to vector<8xf32>
    %96 = vector.shape_cast %95 : vector<8xf32> to vector<8x1xf32>
    %97 = vector.broadcast %96 : vector<8x1xf32> to vector<8x8xf32>
    %98 = arith.subf %94, %97 : vector<8x8xf32>
    %99 = math.exp %98 : vector<8x8xf32>
    %cst_31 = arith.constant dense<0.000000e+00> : vector<8xf32>
    %100 = vector.multi_reduction <add>, %99, %cst_31 [1] : vector<8x8xf32> to vector<8xf32>
    %101 = vector.shape_cast %100 : vector<8xf32> to vector<8x1xf32>
    %102 = tpu.reciprocal %101 {approx = true} : vector<8x1xf32> -> vector<8x1xf32>
    %103 = vector.broadcast %102 : vector<8x1xf32> to vector<8x8xf32>
    %104 = arith.mulf %99, %103 : vector<8x8xf32>
    %105 = arith.truncf %104 : vector<8x8xf32> to vector<8x8xbf16>
    %cst_32 = arith.constant dense<0.000000e+00> : vector<8x16xf32>
    %106 = tpu.matmul %105, %90, %cst_32 {dimension_numbers = #tpu.dot_dimension_numbers<[1], [0], [0], [1], [0, 0, 1, 1], [], []>} : vector<8x8xbf16>, vector<8x16xbf16>, vector<8x16xf32> -> vector<8x16xf32>
    %107 = tpu.concatenate %34, %58, %82, %106 in 1 : vector<8x16xf32>, vector<8x16xf32>, vector<8x16xf32>, vector<8x16xf32> -> vector<8x64xf32>
    %108 = arith.truncf %107 : vector<8x64xf32> to vector<8x64xbf16>
    %c0_33 = arith.constant 0 : index
    %c0_34 = arith.constant 0 : index
    %109 = vector.load %arg5[%c0_33, %c0_34] : memref<64x32xbf16, #tpu.memory_space<vmem>>, vector<64x32xbf16>
    %cst_35 = arith.constant dense<0.000000e+00> : vector<8x32xf32>
    %110 = tpu.matmul %108, %109, %cst_35 {dimension_numbers = #tpu.dot_dimension_numbers<[1], [0], [0], [1], [0, 0, 1, 1], [], []>} : vector<8x64xbf16>, vector<64x32xbf16>, vector<8x32xf32> -> vector<8x32xf32>
    %c0_36 = arith.constant 0 : index
    %c0_37 = arith.constant 0 : index
    %111 = vector.load %arg6[%c0_36, %c0_37] : memref<1x32xf32, #tpu.memory_space<vmem>>, vector<1x32xf32>
    %112 = vector.broadcast %111 : vector<1x32xf32> to vector<8x32xf32>
    %113 = arith.addf %110, %112 : vector<8x32xf32>
    %cst_38 = arith.constant dense<0.000000e+00> : vector<8xf32>
    %114 = vector.multi_reduction <add>, %113, %cst_38 [1] : vector<8x32xf32> to vector<8xf32>
    %115 = vector.shape_cast %114 : vector<8xf32> to vector<8x1xf32>
    %cst_39 = arith.constant 3.200000e+01 : f32
    %116 = vector.broadcast %cst_39 : f32 to vector<8x1xf32>
    %117 = arith.divf %115, %116 : vector<8x1xf32>
    %118 = vector.broadcast %117 : vector<8x1xf32> to vector<8x32xf32>
    %119 = arith.subf %113, %118 : vector<8x32xf32>
    %120 = arith.mulf %119, %119 : vector<8x32xf32>
    %cst_40 = arith.constant dense<0.000000e+00> : vector<8xf32>
    %121 = vector.multi_reduction <add>, %120, %cst_40 [1] : vector<8x32xf32> to vector<8xf32>
    %122 = vector.shape_cast %121 : vector<8xf32> to vector<8x1xf32>
    %cst_41 = arith.constant 3.200000e+01 : f32
    %123 = vector.broadcast %cst_41 : f32 to vector<8x1xf32>
    %124 = arith.divf %122, %123 : vector<8x1xf32>
    %125 = vector.broadcast %117 : vector<8x1xf32> to vector<8x32xf32>
    %126 = arith.subf %113, %125 : vector<8x32xf32>
    %cst_42 = arith.constant 9.99999974E-6 : f32
    %127 = vector.broadcast %cst_42 : f32 to vector<8x1xf32>
    %128 = arith.addf %124, %127 : vector<8x1xf32>
    %129 = math.rsqrt %128 : vector<8x1xf32>
    %130 = vector.broadcast %129 : vector<8x1xf32> to vector<8x32xf32>
    %131 = arith.mulf %126, %130 : vector<8x32xf32>
    %c0_43 = arith.constant 0 : index
    %c0_44 = arith.constant 0 : index
    %132 = vector.load %arg7[%c0_43, %c0_44] : memref<1x32xf32, #tpu.memory_space<vmem>>, vector<1x32xf32>
    %133 = vector.broadcast %132 : vector<1x32xf32> to vector<8x32xf32>
    %134 = arith.mulf %131, %133 : vector<8x32xf32>
    %c0_45 = arith.constant 0 : index
    %c0_46 = arith.constant 0 : index
    %135 = vector.load %arg8[%c0_45, %c0_46] : memref<1x32xf32, #tpu.memory_space<vmem>>, vector<1x32xf32>
    %136 = vector.broadcast %135 : vector<1x32xf32> to vector<8x32xf32>
    %137 = arith.addf %134, %136 : vector<8x32xf32>
    %c0_47 = arith.constant 0 : index
    %c0_48 = arith.constant 0 : index
    %c0_49 = arith.constant 0 : index
    %138 = vector.load %arg9[%c0_47, %c0_48, %c0_49] : memref<1x8x32xf32, #tpu.memory_space<vmem>>, vector<1x8x32xf32>
    %139 = vector.shape_cast %138 : vector<1x8x32xf32> to vector<8x32xf32>
    %140 = vector.shape_cast %137 : vector<8x32xf32> to vector<1x8x32xf32>
    tpu.vector_store %arg9[%c0_47, %c0_48, %c0_49], %140 {strides = array<i32>} : memref<1x8x32xf32, #tpu.memory_space<vmem>>, vector<1x8x32xf32>,
    return
  }
  func.func @transform_0(%arg0: i32) -> (i32, i32, i32) {
    %c0_i32 = arith.constant 0 : i32
    %c0_i32_0 = arith.constant 0 : i32
    %c0_i32_1 = arith.constant 0 : i32
    return %arg0, %c0_i32, %c0_i32_0 : i32, i32, i32
  }
  func.func @transform_1(%arg0: i32) -> (i32, i32, i32) {
    %c0_i32 = arith.constant 0 : i32
    %c0_i32_0 = arith.constant 0 : i32
    %c0_i32_1 = arith.constant 0 : i32
    return %arg0, %c0_i32, %c0_i32_0 : i32, i32, i32
  }
  func.func @transform_2(%arg0: i32) -> (i32, i32) {
    %c0_i32 = arith.constant 0 : i32
    %c0_i32_0 = arith.constant 0 : i32
    %c0_i32_1 = arith.constant 0 : i32
    return %c0_i32, %c0_i32_0 : i32, i32
  }
  func.func @transform_3(%arg0: i32) -> (i32, i32) {
    %c0_i32 = arith.constant 0 : i32
    %c0_i32_0 = arith.constant 0 : i32
    %c0_i32_1 = arith.constant 0 : i32
    return %c0_i32, %c0_i32_0 : i32, i32
  }
  func.func @transform_4(%arg0: i32) -> (i32, i32) {
    %c0_i32 = arith.constant 0 : i32
    %c0_i32_0 = arith.constant 0 : i32
    %c0_i32_1 = arith.constant 0 : i32
    return %c0_i32, %c0_i32_0 : i32, i32
  }
  func.func @transform_5(%arg0: i32) -> (i32, i32) {
    %c0_i32 = arith.constant 0 : i32
    %c0_i32_0 = arith.constant 0 : i32
    %c0_i32_1 = arith.constant 0 : i32
    return %c0_i32, %c0_i32_0 : i32, i32
  }
  func.func @transform_6(%arg0: i32) -> (i32, i32) {
    %c0_i32 = arith.constant 0 : i32
    %c0_i32_0 = arith.constant 0 : i32
    %c0_i32_1 = arith.constant 0 : i32
    return %c0_i32, %c0_i32_0 : i32, i32
  }
  func.func @transform_7(%arg0: i32) -> (i32, i32) {
    %c0_i32 = arith.constant 0 : i32
    %c0_i32_0 = arith.constant 0 : i32
    %c0_i32_1 = arith.constant 0 : i32
    return %c0_i32, %c0_i32_0 : i32, i32
  }
  func.func @transform_8(%arg0: i32) -> (i32, i32, i32) {
    %c0_i32 = arith.constant 0 : i32
    %c0_i32_0 = arith.constant 0 : i32
    %c0_i32_1 = arith.constant 0 : i32
    return %arg0, %c0_i32, %c0_i32_0 : i32, i32, i32
  }
}

</mosaic_0001>

<bundles_post_ra>
// kernel: tpu_custom_call.1
= control target key start
LH: loop header
LB: loop body
LE: loop exit
PB: predicated region body
PF: predicated region fallthrough
CT: control target
= control target key end

     0   :  { %13 = vsyncpa [#allocation3], 0  ;;  %s1277_s0 = inlined_call_operand.vmem [shape: bf16[2,8,32], index: 0, kind: input, shape index: {}]   ;;  %s1278_s1 = inlined_call_operand.vmem [shape: s8[2,8,8], index: 1, kind: input, shape index: {}]   ;;  %s1279_s2 = inlined_call_operand.vmem [shape: bf16[32,192], index: 2, kind: input, shape index: {}]   ;;  %s1280_s3 = inlined_call_operand.vmem [shape: f32[1,192], index: 3, kind: input, shape index: {}]   ;;  %s1281_s4 = inlined_call_operand.vmem [shape: bf16[64,32], index: 4, kind: input, shape index: {}]   ;;  %s1282_s5 = inlined_call_operand.vmem [shape: f32[1,32], index: 5, kind: input, shape index: {}]   ;;  %s1283_s6 = inlined_call_operand.vmem [shape: f32[1,32], index: 6, kind: input, shape index: {}]   ;;  %s1284_s7 = inlined_call_operand.vmem [shape: f32[1,32], index: 7, kind: input, shape index: {}]   ;;  %s1285_s8 = inlined_call_operand.hbm [shape: f32[2,8,32], index: 8, kind: output, shape index: {}]  }
   0x1   :  { %15 = vsyncpa [#allocation3 + $0x1], 0  ;;  %s1069_s27 = smov 0   ;;  %s1071_s28 = smov 0  }
   0x2   :  { %s1073_s29 = smov 0   ;;  %s1075_s30 = smov 0  }
   0x3 LB: > { %s1090_s9 = sadd.s32 4294967295, %s1013_s30   ;;  %s818_s10 = sadd.s32 4294967294, %s1013_s30   ;;  %s1013_s30 = sphi %s1075_s30, %s1295_s30   ;;  %s1009_s29 = sphi %s1073_s29, %s1294_s29   ;;  %s1005_s28 = sphi %s1071_s28, %s1293_s28   ;;  %s1001_s27 = sphi %s1069_s27, %s1292_s27  }
   0x4   : > { %s1094_s11 = sadd.s32 1, %s1013_s30   ;;  %s206_s12 = sadd.s32 1, %s1009_s29 }
   0x5   : > { %s203_s13 = ssub.s32 %s1013_s30, %s1094_s11  ;;  %p216_p0 = scmp.ne.s32.totalorder %s1009_s29, %s1005_s28 }
   0x6   : > { %p204_p1 = scmp.eq.s32.totalorder %s203_s13, 0  ;;  %p217_p2 = scmp.eq.s32.totalorder %s1090_s9, 1 }
   0x7   : > { %p222_p3 = scmp.ne.s32.totalorder %s1005_s28, %s1001_s27  ;;  %p223_p4 = scmp.eq.s32.totalorder %s818_s10, 1 }
   0x8   : > { %s1105_s14 = scalar_select %p204_p1, %s1009_s29, %s206_s12  }
   0x9   : > { %p1107_p5 = por %p217_p2, %p216_p0  ;;  %p1111_p6 = por %p223_p4, %p222_p3 }
   0xa   : > { %p821_p7 = scmp.ge.s32.totalorder %s1013_s30, 1  ;;  %p273_p8 = scmp.lt.s32.totalorder %s1013_s30, 3 }
   0xc   : > { %p274_p9 = pnand %p821_p7, %p273_p8 }
   0xd   : > { %p310_p10 = scmp.lt.s32.totalorder (!%p274_p9), %s1090_s9, 1  ;;  %s1015_s19 = smov (!%p274_p9), 64  }
   0xe   : > { %277 = sbr.rel (%p274_p9) target bundleno = 1740 (0x6cc), region = 52  ;;  %s1016_s20 = smov (!%p274_p9), 112  }
   0xf   : > { %s1017_s21 = smov (!%p274_p9), 32   ;;  %s1286_s22 = smov (!%p274_p9), 16  }
  0x10   : > { %s1019_s23 = smov (!%p274_p9), 96   ;;  %s1020_s24 = smov (!%p274_p9), 80  }
  0x13   : > { %v835_v0 = vld [vmem:[%s1279_s2 + $0x10] sm:$0xf]  ;;  %v875_v1 = vld [vmem:[%s1279_s2 + $0x14] sm:$0xf0]  ;;  %v827_v2 = vld [vmem:[%s1279_s2] sm:$0xf] }
  0x14   : > { %v836_v3 = vor.u32 %v875_v1, %v835_v0  ;;  %v873_v4 = vld [vmem:[%s1279_s2 + $0x4] sm:$0xf0]  ;;  %s1131_s25 = scalar_select %p310_p10, %s1090_s9, 1  ;;  %vm354_vm0 = vcmask 261120   ;;  %v1141_v7 = vld [vmem:[%s1280_s3] sm:$0x3] }
  0x15   : > { %v828_v5 = vor.u32 %v873_v4, %v827_v2  ;;  %v330_v8 = vperm.slane %v1141_v7, 0  ;;  %v874_v15 = vld [vmem:[%s1279_s2 + $0x14] sm:$0xf]  ;;  %v837_v16 = vld [vmem:[%s1279_s2 + $0x18] sm:$0xf0]  ;;  %vm391_vm1 = vcmask 130048  }
  0x16   : > { %364 = vmatpush.bf16.msra.mxu0 %v836_v3  ;;  %s823_s26 = sshll.u32 %s1131_s25, 2  ;;  %v840_v17 = vor.u32 %v874_v15, %v837_v16  ;;  %v872_v18 = vld [vmem:[%s1279_s2 + $0x4] sm:$0xf]  ;;  %v829_v19 = vld [vmem:[%s1279_s2 + $0x8] sm:$0xf0]  ;;  %v1021_v31 = vmov 0  }
  0x17   : > { %s313_s13 = scalar_lea.vmem %s1277_s0, %s823_s26  ;;  %v832_v20 = vor.u32 %v872_v18, %v829_v19  ;;  %vm415_vm4 = vcmask 64512   ;;  %v331_v48 = vperm.slane %v1141_v7, 1  ;;  %vm431_vm5 = vcmask 1043456  }
  0x18   : > { %v321_v6 = vld [vmem:[%s313_s13] sm:$0xf]  ;;  %377 = vmatpush.bf16.msra.mxu1 %v840_v17  ;;  %vm635_vm6 = vcmask 392192   ;;  %vm674_vm7 = vcmask 523264  }
  0x1a   : > { %365 = vmatpush.bf16.msra.mxu0 %v828_v5 }
  0x1c   : > { %378 = vmatpush.bf16.msra.mxu1 %v832_v20 }
  0x1d   : > { %841 = vmatmul.msk.bf16.vlgmr.msra.gmra.mxu0 %vm354_vm0, %v321_v6 }
  0x1f   : > { %842 = vmatmul.msk.bf16.vlgmr.msra.gmra.mxu1 %vm354_vm0, %v321_v6 }
  0x9a   : > { %v367_v9 = vpop.f32.mrf.mxu0 }
  0x9b   : > { %v368_v10 = vadd.f32 %v367_v9, %v330_v8 }
  0x9c   : > { %v380_v28 = vpop.f32.mrf.mxu1 }
  0x9d   : > { %v384_v11 = vmul.f32 0.35355338, %v368_v10  ;;  %v1144_v12 = vpack.c.bf16 %v368_v10, %v368_v10  ;;  %v381_v49 = vadd.f32 %v380_v28, %v331_v48  ;;  %v876_v48 = vld [vmem:[%s1281_s4] sm:$0xff] }
  0x9f   : > { %v385_v13 = vpack.c.bf16 %v384_v11, %v384_v11  ;;  %389 = vrot.lane.b32.xlu0 %v1144_v12, %s1015_s19  ;;  %v387_v50 = vpack.c.bf16 %v381_v49, %v381_v49 }
  0xa1   : > { %449 = vrot.lane.b32.xlu2 %v385_v13, %s1016_s20  ;;  %v433_v51 = vsel %vm431_vm5, %v387_v50, 0 }
  0xa2   : > { %v369_v14 = vpop.f32.mrf.mxu0  ;;  %442 = vmatpush.bf16.msra.mxu3 %v433_v51 }
  0xa4   : > { %v382_v29 = vpop.f32.mrf.mxu1 }
  0xa9   : > { %509 = vrot.lane.b32.xlu2 %v1144_v12, %s1017_s21 }
  0xb1   : > { %566 = vrot.lane.b32.xlu2 %v1144_v12, %s1286_s22  ;;  %s824_s22 = sshll.u32 %s1131_s25, 1  ;;  %s1022_s25 = smov 48  }
  0xb2   : > { %s317_s12 = scalar_lea.vmem %s1278_s1, %s824_s22 }
  0xb3   : > { %v322_v30 = vld [vmem:[%s317_s12] sm:$0x3]  ;;  %s307_s12 = sand.u32 1, %s1005_s28  }
  0xb4   : > { %vm323_vm2 = vnez %v322_v30  ;;  %s732_s10 = scalar_lea.sflag [#allocation3], %s307_s12 }
  0xb5   : > { %v411_v32 = vsel %vm323_vm2, 16843009, %v1021_v31 }
  0xb6   : > { %v412_v33 = vunpack.c.0.s8 %v411_v32 }
  0xb8   : > { %vm1175_vm3 = vcmp.ne.s32.totalorder %v412_v33, 0 }
  0xb9   : > { %507 = vrot.lane.b32.xlu2 %v385_v13, %s1019_s23 }
  0xc1   : > { %564 = vrot.lane.b32.xlu2 %v385_v13, %s1020_s24 }
  0xfb   : > { %v450_v21 = vpop.permute.xlu2 %449 }
 0x103   : > { %v510_v22 = vpop.permute.xlu2 %509 }
 0x104   : > { %v515_v23 = vsel %vm391_vm1, %v510_v22, 0 }
 0x105   : > { %524 = vmatpush.bf16.xpose.msrb.mxu1 %v515_v23 }
 0x10b   : > { %v567_v24 = vpop.permute.xlu2 %566 }
 0x10c   : > { %v572_v58 = vsel %vm391_vm1, %v567_v24, 0 }
 0x111   : > { %v390_v25 = vpop.permute.xlu0 %389 }
 0x112   : > { %v396_v26 = vsel %vm391_vm1, %v390_v25, 0 }
 0x113   : > { %405 = vmatpush.bf16.xpose.msra.mxu2 %v396_v26  ;;  %v508_v27 = vpop.permute.xlu2 %507 }
 0x114   : > { %847 = vmatmul.msk.bf16.vlgmr.msrb.gmra.mxu1 %vm391_vm1, %v508_v27 }
 0x11a   : > { %843 = vmatmul.msk.bf16.vlgmr.msra.gmra.mxu2 %vm391_vm1, %v385_v13 }
 0x11b   : > { %v565_v59 = vpop.permute.xlu2 %564 }
 0x191   : > { %v526_v35 = vpop.f32.mrf.mxu1 }
 0x192   : > { %v530_v36 = vsel %vm1175_vm3, -1e+09, %v526_v35 }
 0x193   : > { %v531_v37 = vsel %vm415_vm4, %v530_v36, -inf }
 0x194   : > { %532 = vmax.xlane.f32.xlu2 %v531_v37 }
 0x199   : > { %v528_v38 = vpop.f32.mrf.mxu1 }
 0x19d   : > { %v407_v39 = vpop.f32.mrf.mxu2 }
 0x19e   : > { %v414_v40 = vsel %vm1175_vm3, -1e+09, %v407_v39 }
 0x19f   : > { %v416_v41 = vsel %vm415_vm4, %v414_v40, -inf }
 0x1a0   : > { %417 = vmax.xlane.f32.xlu0 %v416_v41 }
 0x1a5   : > { %v409_v42 = vpop.f32.mrf.mxu2 }
 0x207   : > { %v533_v62 = vpop.xlane.xlu2 %532 }
 0x208   : > { %v534_v63 = vsub.f32 %v530_v36, %v533_v62  ;;  %v1023_v62 = vmov 32.0  }
 0x20a   : > { %v535_v0 = vmul.f32 1.442695, %v534_v63 }
 0x213   : > { %v418_v43 = vpop.xlane.xlu0 %417 }
 0x214   : > { %v419_v44 = vsub.f32 %v414_v40, %v418_v43 }
 0x216   : > { %v420_v45 = vmul.f32 1.442695, %v419_v44 }
 0x218   : > { %931 = vpow2.f32 %v420_v45  ;;  %v879_v45 = vld [vmem:[%s1281_s4 + $0x18] sm:$0xff] }
 0x219   : > { %682 = vmatpush.bf16.msra.mxu1 %v879_v45 }
 0x21e   : > { %v932_v46 = vpop.eup %931 }
 0x21f   : > { %v422_v47 = vsel %vm415_vm4, %v932_v46, 0.0 }
 0x220   : > { %423 = vadd.xlane.f32.xlu1 %v422_v47  ;;  %v877_v47 = vld [vmem:[%s1281_s4 + $0x8] sm:$0xff] }
 0x239   : > { %451 = vrot.lane.b32.xlu1 %v1144_v12, %s1022_s25 }
 0x293   : > { %v424_v52 = vpop.xlane.xlu1 %423 }
 0x294   : > { %933 = vrcp.f32 %v424_v52 }
 0x295   : > { %935 = vpow2.f32 %v535_v0 }
 0x29a   : > { %v934_v53 = vpop.eup %933 }
 0x29b   : > { %v426_v54 = vmul.f32 %v934_v53, %v932_v46  ;;  %v936_v4 = vpop.eup %935  ;;  %v878_v46 = vld [vmem:[%s1281_s4 + $0x10] sm:$0xff] }
 0x29c   : > { %v537_v6 = vsel %vm415_vm4, %v936_v4, 0.0  ;;  %683 = vmatpush.bf16.msra.mxu1 %v878_v46 }
 0x29d   : > { %v427_v55 = vpack.c.bf16 %v426_v54, %v426_v54 }
 0x29f   : > { %844 = vmatmul.msk.bf16.vlgmr.msra.gmra.mxu3 %vm415_vm4, %v427_v55 }
 0x2a0   : > { %684 = vmatpush.bf16.msra.mxu1 %v877_v47 }
 0x2a4   : > { %685 = vmatpush.bf16.msra.mxu1 %v876_v48 }
 0x2ab   : > { %v452_v56 = vpop.permute.xlu1 %451 }
 0x2ac   : > { %v457_v57 = vsel %vm391_vm1, %v452_v56, 0  ;;  %v928_v56 = vld [vmem:[%s1282_s5] ss:$0 sm:$0xff] }
 0x2ad   : > { %466 = vmatpush.bf16.xpose.msrb.mxu3 %v457_v57 }
 0x2b4   : > { %845 = vmatmul.msk.bf16.vlgmr.msrb.gmra.mxu3 %vm391_vm1, %v450_v21 }
 0x2b5   : > { %581 = vmatpush.bf16.xpose.msra.mxu3 %v572_v58 }
 0x2c4   : > { %849 = vmatmul.msk.bf16.vlgmr.msra.gmra.mxu3 %vm391_vm1, %v565_v59 }
 0x322   : > { %v1195_v60 = vpop.f32.mrf.mxu3 }
 0x32a   : > { %v446_v61 = vpop.f32.mrf.mxu3 }
 0x337   : > { %v468_v1 = vpop.f32.mrf.mxu3 }
 0x338   : > { %v472_v2 = vsel %vm1175_vm3, -1e+09, %v468_v1 }
 0x339   : > { %v473_v3 = vsel %vm415_vm4, %v472_v2, -inf }
 0x33a   : > { %474 = vmax.xlane.f32.xlu1 %v473_v3 }
 0x33f   : > { %v470_v5 = vpop.f32.mrf.mxu3 }
 0x342   : > { %538 = vadd.xlane.f32.xlu1 %v537_v6 }
 0x347   : > { %v583_v7 = vpop.f32.mrf.mxu3 }
 0x348   : > { %v587_v8 = vsel %vm1175_vm3, -1e+09, %v583_v7 }
 0x349   : > { %v588_v9 = vsel %vm415_vm4, %v587_v8, -inf }
 0x34a   : > { %589 = vmax.xlane.f32.xlu0 %v588_v9 }
 0x34f   : > { %v585_v10 = vpop.f32.mrf.mxu3 }
 0x35b   : > { %543 = vrot.lane.b32.xlu1 %v387_v50, %s1019_s23 }
 0x35e   : > { %486 = vrot.lane.b32.xlu0 %v387_v50, %s1016_s20  ;;  %s1291_s20 = smov 16  }
 0x3ad   : > { %v475_v11 = vpop.xlane.xlu1 %474 }
 0x3ae   : > { %v476_v12 = vsub.f32 %v472_v2, %v475_v11 }
 0x3b0   : > { %v477_v13 = vmul.f32 1.442695, %v476_v12 }
 0x3b2   : > { %937 = vpow2.f32 %v477_v13 }
 0x3b5   : > { %v539_v18 = vpop.xlane.xlu1 %538 }
 0x3b8   : > { %v938_v14 = vpop.eup %937 }
 0x3b9   : > { %v479_v15 = vsel %vm415_vm4, %v938_v14, 0.0 }
 0x3ba   : > { %480 = vadd.xlane.f32.xlu0 %v479_v15 }
 0x3bd   : > { %v590_v16 = vpop.xlane.xlu0 %589 }
 0x3be   : > { %v591_v17 = vsub.f32 %v587_v8, %v590_v16 }
 0x3c0   : > { %v592_v19 = vmul.f32 1.442695, %v591_v17 }
 0x3c2   : > { %939 = vpow2.f32 %v592_v19 }
 0x3c3   : > { %941 = vrcp.f32 %v539_v18  ;;  %v929_v18 = vld [vmem:[%s1283_s6] ss:$0 sm:$0xff] }
 0x3c8   : > { %v940_v20 = vpop.eup %939 }
 0x3c9   : > { %v942_v21 = vpop.eup %941  ;;  %v594_v22 = vsel %vm415_vm4, %v940_v20, 0.0 }
 0x3ca   : > { %595 = vadd.xlane.f32.xlu2 %v594_v22  ;;  %v541_v23 = vmul.f32 %v942_v21, %v936_v4  ;;  %v930_v21 = vld [vmem:[%s1284_s7] ss:$0 sm:$0xff] }
 0x3cc   : > { %v542_v27 = vpack.c.bf16 %v541_v23, %v541_v23 }
 0x3cd   : > { %v544_v24 = vpop.permute.xlu1 %543 }
 0x3ce   : > { %600 = vrot.lane.b32.xlu0 %v387_v50, %s1020_s24  ;;  %v549_v25 = vsel %vm431_vm5, %v544_v24, 0 }
 0x3cf   : > { %558 = vmatpush.bf16.msrb.mxu2 %v549_v25 }
 0x3d0   : > { %v487_v26 = vpop.permute.xlu0 %486 }
 0x3d1   : > { %v492_v28 = vsel %vm431_vm5, %v487_v26, 0 }
 0x3d2   : > { %501 = vmatpush.bf16.msrb.mxu0 %v492_v28  ;;  %848 = vmatmul.msk.bf16.vlgmr.msrb.gmra.mxu2 %vm415_vm4, %v542_v27 }
 0x42d   : > { %v481_v29 = vpop.xlane.xlu0 %480 }
 0x42e   : > { %943 = vrcp.f32 %v481_v29 }
 0x434   : > { %v944_v30 = vpop.eup %943 }
 0x435   : > { %v483_v31 = vmul.f32 %v944_v30, %v938_v14 }
 0x437   : > { %v484_v32 = vpack.c.bf16 %v483_v31, %v483_v31 }
 0x439   : > { %846 = vmatmul.msk.bf16.vlgmr.msrb.gmra.mxu0 %vm415_vm4, %v484_v32 }
 0x43d   : > { %v596_v33 = vpop.xlane.xlu2 %595 }
 0x43e   : > { %945 = vrcp.f32 %v596_v33 }
 0x43f   : > { %947 = vrcp.f32 %v1023_v62 }
 0x440   : > { %v601_v34 = vpop.permute.xlu0 %600 }
 0x441   : > { %v606_v35 = vsel %vm431_vm5, %v601_v34, 0 }
 0x442   : > { %615 = vmatpush.bf16.msra.mxu0 %v606_v35 }
 0x444   : > { %v946_v36 = vpop.eup %945 }
 0x445   : > { %v598_v37 = vmul.f32 %v946_v36, %v940_v20 }
 0x447   : > { %v599_v38 = vpack.c.bf16 %v598_v37, %v598_v37 }
 0x449   : > { %850 = vmatmul.msk.bf16.vlgmr.msra.gmra.mxu0 %vm415_vm4, %v599_v38 }
 0x455   : > { %v560_v39 = vpop.f32.mrf.mxu2 }
 0x456   : > { %626 = vrot.lane.b32.xlu0 %v560_v39, %s1017_s21 }
 0x45d   : > { %v562_v40 = vpop.f32.mrf.mxu2 }
 0x4b6   : > { %v503_v41 = vpop.f32.mrf.mxu0 }
 0x4b7   : > { %622 = vrot.lane.b32.xlu2 %v503_v41, %s1291_s20  ;;  %s869_s20 = sshll.u32 %s1090_s9, 3 }
 0x4b8   : > { %s742_s21 = scalar_lea.hbm %s1285_s8, %s869_s20 }
 0x4b9   : > { %s746_s26 = sshll.u32 %s742_s21, 4  ;;  %s747_s26 = int_to_ptr.hbm [resolvable:$true] %s746_s26 }
 0x4ba   : > { %s965_s23 = sshra.s32 %s747_s26, 4  ;;  %s966_s23 = int_to_ptr.hbm [resolvable:$true] %s965_s23 }
 0x4bb   : > { %s967_s20 = scalar_lea.hbm %s966_s23, 8  ;;  %p972_p0 = scmp.lt.s32.totalorder %s966_s23, %s1285_s8 }
 0x4bc   : > { %p968_p11 = scmp.ne.s32.totalorder %s966_s23, %s967_s20 }
 0x4be   : > { %v505_v42 = vpop.f32.mrf.mxu0  ;;  %p969_p12 = pnand %p968_p11, %p1107_p5 }
 0x4c0   : > { %p970_p13 = pneg %p969_p12 }
 0x4c6   : > { %v617_v43 = vpop.f32.mrf.mxu0 }
 0x4c7   : > { %630 = vrot.lane.b32.xlu0 %v617_v43, %s1022_s25  ;;  %s822_s25 = sshll.u32 %s307_s12, 3 }
 0x4c8   : > { %v627_v49 = vpop.permute.xlu0 %626  ;;  %s309_s22 = scalar_lea.vmem [#allocation2], %s822_s25  ;;  %s971_s25 = scalar_lea.hbm %s1285_s8, 16 }
 0x4c9   : > { %s744_s9 = sshll.u32 %s309_s22, 4  ;;  %p973_p1 = scmp.lt.s32.totalorder %s971_s25, %s967_s20  ;;  %s745_s9 = int_to_ptr.vmem [resolvable:$true] %s744_s9 }
 0x4cb   : > { %p974_p2 = por %p973_p1, %p972_p0 }
 0x4cd   : > { %p975_p3 = pnand %p974_p2, %p970_p13 }
 0x4ce   : > { %v619_v44 = vpop.f32.mrf.mxu0 }
 0x511   : > { %v623_v50 = vpop.permute.xlu2 %622 }
 0x512   : > { %v633_v51 = vsel %vm391_vm1, %v1195_v60, %v623_v50  ;;  %v948_v60 = vpop.eup %947 }
 0x513   : > { %v634_v52 = vsel %vm354_vm0, %v633_v51, %v627_v49  ;;  %v695_v63 = vmul.f32 32.0, %v948_v60  ;;  %vm699_vm8 = vweird.f32 %v948_v60 }
 0x515   : > { %v696_v0 = vsub.f32 1.0, %v695_v63 }
 0x517   : > { %v697_v1 = vmul.f32 %v948_v60, %v696_v0 }
 0x519   : > { %v698_v2 = vadd.f32 %v948_v60, %v697_v1 }
 0x51b   : > { %v700_v3 = vsel %vm699_vm8, %v948_v60, %v698_v2 }
 0x539   : > { %v631_v53 = vpop.permute.xlu0 %630 }
 0x53a   : > { %v636_v54 = vsel %vm635_vm6, %v634_v52, %v631_v53 }
 0x53b   : > { %v637_v55 = vpack.c.bf16 %v636_v54, %v636_v54 }
 0x53d   : > { %867 = vmatmul.msk.bf16.vlgmr.msra.gmra.mxu1 %vm674_vm7, %v637_v55 }
 0x5ba   : > { %v687_v57 = vpop.f32.mrf.mxu1 }
 0x5bb   : > { %v688_v58 = vadd.f32 %v928_v56, %v687_v57 }
 0x5bd   : > { %v691_v59 = vsel %vm354_vm0, %v688_v58, 0.0 }
 0x5be   : > { %692 = vadd.xlane.f32.xlu1 %v691_v59 }
 0x5c2   : > { %v689_v61 = vpop.f32.mrf.mxu1 }
 0x631   : > { %v693_v4 = vpop.xlane.xlu1 %692 }
 0x632   : > { %v701_v5 = vmul.f32 %v700_v3, %v693_v4 }
 0x634   : > { %v702_v6 = vsub.f32 %v688_v58, %v701_v5 }
 0x636   : > { %v703_v7 = vmul.f32 %v702_v6, %v702_v6 }
 0x638   : > { %v704_v8 = vsel %vm354_vm0, %v703_v7, 0.0 }
 0x639   : > { %705 = vadd.xlane.f32.xlu0 %v704_v8 }
 0x6ac   : > { %v706_v9 = vpop.xlane.xlu0 %705 }
 0x6ad   : > { %v707_v10 = vmul.f32 %v706_v9, %v700_v3 }
 0x6af   : > { %v708_v11 = vadd.f32 1e-05, %v707_v10 }
 0x6b1   : > { %949 = vrsqrt.f32 %v708_v11  ;;  %vm715_vm10 = vweird.f32 %v708_v11 }
 0x6b7   : > { %v950_v12 = vpop.eup %949 }
 0x6b8   : > { %v710_v13 = vmul.f32 %v950_v12, %v708_v11  ;;  %vm716_vm9 = vweird.f32 %v950_v12 }
 0x6b9   : > { %vm717_vm11 = vmor %vm715_vm10, %vm716_vm9 }
 0x6ba   : > { %v711_v14 = vmul.f32 %v950_v12, %v710_v13 }
 0x6bc   : > { %v712_v15 = vmul.f32 0.5, %v711_v14 }
 0x6be   : > { %v713_v16 = vsub.f32 1.5, %v712_v15 }
 0x6c0   : > { %v714_v17 = vmul.f32 %v950_v12, %v713_v16 }
 0x6c2   : > { %v718_v19 = vsel %vm717_vm11, %v950_v12, %v714_v17 }
 0x6c3   : > { %v719_v20 = vmul.f32 %v718_v19, %v702_v6 }
 0x6c5   : > { %v724_v22 = vmul.f32 %v929_v18, %v719_v20 }
 0x6c7   : > { %v729_v23 = vadd.f32 %v930_v21, %v724_v22 }
 0x6c9   : > { %730 = vst.msk [vmem:[%s309_s22] sm:$0xff] %vm354_vm0, %v729_v23 }
 0x6ca   : > { %978 = shalt.err (!%p975_p3)
}
 0x6cb   : > { %880 = dma.vmem_to_hbm [thread:$0]  (%p1107_p5), %s745_s9, 128, %s747_s26, %s732_s10  }
 0x6cc PF: > { %p886_p4 = scmp.ge.s32.totalorder %s1013_s30, 2  ;;  %s758_s12 = sand.u32 1, %s1001_s27  }
 0x6cd   : > { %s759_s18 = scalar_lea.sflag [#allocation3], %s758_s12 }
 0x6ce   : > { %p883_p7 = pnand %p886_p4, %p1111_p6 }
 0x6d0   : > { %p884_p8 = pneg %p883_p7 }
 0x6d2   : > { %996 = dma.done.wait (%p884_p8), %s759_s18, 128  }
 0x6d3   : > { %998 = vsyncadd (%p884_p8), %s759_s18, 4294967168  ;;  %p18_p9 = scmp.ge.s32.totalorder %s1094_s11, 4   ;;  %s1292_s27 = smov %s1005_s28 }
 0x6d4   : > { %s1293_s28 = smov %s1009_s29  ;;  %s1294_s29 = smov %s1105_s14 }
 0x6d5   : > { %s1295_s30 = smov %s1094_s11  ;;  %20 = sbr.rel (!%p18_p9) target bundleno = 3 (0x3), region = 90 }
 0x6da   :  { %765 = vsyncpa [#allocation3], 1 }
 0x6db   :  { %767 = vsyncpa [#allocation3 + $0x1], 1 }

</bundles_post_ra>
